<compile_context>
chip_gen: v7x
topology: tpu7x:2x2x1
jax: 0.10.0
libtpu: 0.0.40
codegen_flags: <defaults>
</compile_context>

<pallas_src>
import functools

import jax
import jax.numpy as jnp
from jax.experimental import pallas as pl
from jax.experimental.pallas import tpu as pltpu


def _round_up(a: int, b: int) -> int:
    return ((a + b - 1) // b) * b


def _cdiv(a: int, b: int) -> int:
    return (a + b - 1) // b


def _fc_kernel(mask_k, x_ref, w_ref, b_ref, o_ref, acc_ref):
    # x_ref: (1, TK)   w_ref: (TN, TK)   b_ref: (1, TN)
    # o_ref: (1, TN)   acc_ref: (1, TN) f32 scratch (lives across K steps)
    ks = pl.program_id(1)

    @pl.when(ks == 0)
    def _():
        # Fold bias into the accumulator init (no separate add pass).
        acc_ref[...] = b_ref[...].astype(jnp.float32)

    x = x_ref[...]
    w = w_ref[...]
    if mask_k is not None:
        # K does not divide into whole tiles: zero the out-of-range tail of
        # the last tile (both operands, so stale-VMEM garbage never reaches
        # the accumulator). All-true on every non-final step.
        tk = w_ref.shape[1]
        col_w = ks * tk + jax.lax.broadcasted_iota(jnp.int32, w.shape, 1)
        col_x = ks * tk + jax.lax.broadcasted_iota(jnp.int32, x.shape, 1)
        w = jnp.where(col_w < mask_k, w, jnp.zeros_like(w))
        x = jnp.where(col_x < mask_k, x, jnp.zeros_like(x))

    # Contract over K (last axis of both operands): (1, TK) x (TN, TK) -> (1, TN)
    acc_ref[...] += jax.lax.dot_general(
        x, w,
        dimension_numbers=(((1,), (1,)), ((), ())),
        preferred_element_type=jnp.float32)

    @pl.when(ks == pl.num_programs(1) - 1)
    def _():
        o_ref[...] = acc_ref[...].astype(o_ref.dtype)


@functools.partial(jax.jit, static_argnames=("tk", "tn"))
def fc_forward(x, weight, bias, *, tk=None, tn=None):
    """Pallas implementation of FC.forward.

    Args:
      x:      any-shaped array; flattened to (1, -1) like input.view(1, -1).
      weight: (output_dim, input_dim)  -- native PyTorch nn.Linear layout.
      bias:   (output_dim,)
    Returns:
      (1, output_dim) array.
    """
    x_flat = x.reshape(1, -1)                       # (1, K)
    k = x_flat.shape[1]
    n = weight.shape[0]
    assert weight.shape == (n, k)
    assert bias.shape == (n,)

    # ---- Tile selection -----------------------------------------------------
    # N tile: keep the whole output-column range if it is modest; otherwise a
    # lane-aligned 1024-wide tile (sublane- and lane-legal).
    if tn is None:
        tn = n if n <= 4096 else 1024
    tn = min(tn, n)
    num_n = _cdiv(n, tn)

    # K tile: ~4 MiB of weight per tile (double-buffered ~8 MiB), 128-aligned.
    if tk is None:
        target_bytes = 4 * 1024 * 1024
        elt = jnp.dtype(weight.dtype).itemsize
        tk = max(128, (target_bytes // (tn * elt)) // 128 * 128)
    tk = min(tk, _round_up(k, 128))
    num_k = _cdiv(k, tk)

    # In-kernel tail masking only when K has a partial final tile.
    mask_k = None if (k % tk == 0) else k
    kernel = functools.partial(_fc_kernel, mask_k)

    b = bias.reshape(1, n)                          # (1, N)

    out = pl.pallas_call(
        kernel,
        out_shape=jax.ShapeDtypeStruct((1, n), x_flat.dtype),
        grid_spec=pltpu.PrefetchScalarGridSpec(
            num_scalar_prefetch=0,
            grid=(num_n, num_k),
            in_specs=[
                # x: stream (1, TK) slices along K (lane dim 128-aligned).
                pl.BlockSpec((1, tk), lambda j, s: (0, s)),
                # weight: stream (TN, TK) tiles; minor dim is the big K axis
                # so DMAs are lane-dense and contiguous.
                pl.BlockSpec((tn, tk), lambda j, s: (j, s)),
                # bias: tiny, one (1, TN) block per output tile.
                pl.BlockSpec((1, tn), lambda j, s: (0, j)),
            ],
            # Output block constant across the reduction axis (accumulator
            # pattern); written once on the last K step of each N tile.
            out_specs=pl.BlockSpec((1, tn), lambda j, s: (0, j)),
            scratch_shapes=[pltpu.VMEM((1, tn), jnp.float32)],
        ),
        compiler_params=pltpu.CompilerParams(
            dimension_semantics=("parallel", "arbitrary")),
        cost_estimate=pl.CostEstimate(
            flops=2 * k * n,
            transcendentals=0,
            bytes_accessed=(k * n * jnp.dtype(weight.dtype).itemsize
                            + num_n * k * jnp.dtype(x_flat.dtype).itemsize
                            + 2 * n * 4),
        ),
    )(x_flat, weight, b)
    return out


def reference_forward(x, weight, bias):
    return x.reshape(1, -1) @ weight.T + bias[None, :]


if __name__ == "__main__":
    key = jax.random.PRNGKey(0)
    kx, kw, kb = jax.random.split(key, 3)

    # Example input consistent with the module: an arbitrary tensor that gets
    # flattened to (1, input_dim). Small NCHW-like tensor.
    x = jax.random.normal(kx, (2, 4, 16, 16), dtype=jnp.float32)
    input_dim = 2 * 4 * 16 * 16   # 2048
    output_dim = 32

    # Deterministic parameter init (nn.Linear-style uniform bound).
    bound = 1.0 / jnp.sqrt(jnp.float32(input_dim))
    weight = jax.random.uniform(
        kw, (output_dim, input_dim), dtype=jnp.float32,
        minval=-bound, maxval=bound)
    bias = jax.random.uniform(
        kb, (output_dim,), dtype=jnp.float32, minval=-bound, maxval=bound)

    # Small TK so the reduction grid actually has multiple steps at this tiny
    # example size (2048 / 512 = 4 steps); default TK would use one step.
    out = fc_forward(x, weight, bias, tk=512)
    out = jax.block_until_ready(out)

    ref = reference_forward(x, weight, bias)
    assert out.shape == (1, output_dim)
    assert jnp.allclose(out, ref, atol=1e-4, rtol=1e-4)

    print("KERNEL_OK")
</pallas_src>

<mosaic_0001>
module attributes {stable_mosaic.version = 11 : i64} {
  func.func @_fc_kernel(%arg0: i32, %arg1: i32, %arg2: memref<1x512xf32, #tpu.memory_space<vmem>>, %arg3: memref<32x512xf32, #tpu.memory_space<vmem>>, %arg4: memref<1x32xf32, #tpu.memory_space<vmem>>, %arg5: memref<1x32xf32, #tpu.memory_space<vmem>>, %arg6: memref<1x32xf32, #tpu.memory_space<vmem>>) attributes {dimension_semantics = [#tpu.dimension_semantics<parallel>, #tpu.dimension_semantics<arbitrary>], iteration_bounds = array<i64: 1, 4>, scalar_prefetch = 0 : i64, scratch_operands = 1 : i64, tpu.core_type = #tpu.core_type<tc>, window_params = [{transform_indices = @transform_0, window_bounds = array<i64: 1, 512>}, {transform_indices = @transform_1, window_bounds = array<i64: 32, 512>}, {transform_indices = @transform_2, window_bounds = array<i64: 1, 32>}, {transform_indices = @transform_3, window_bounds = array<i64: 1, 32>}]} {
    %c0_i32 = arith.constant 0 : i32
    %0 = arith.cmpi eq, %arg1, %c0_i32 : i32
    %1 = arith.extui %0 : i1 to i32
    %c0_i32_0 = arith.constant 0 : i32
    %2 = arith.cmpi ne, %1, %c0_i32_0 : i32
    scf.if %2 {
      %c0_9 = arith.constant 0 : index
      %c0_10 = arith.constant 0 : index
      %12 = vector.load %arg4[%c0_9, %c0_10] : memref<1x32xf32, #tpu.memory_space<vmem>>, vector<1x32xf32>
      %c0_11 = arith.constant 0 : index
      %c0_12 = arith.constant 0 : index
      %13 = vector.load %arg6[%c0_11, %c0_12] : memref<1x32xf32, #tpu.memory_space<vmem>>, vector<1x32xf32>
      tpu.vector_store %arg6[%c0_11, %c0_12], %12 {strides = array<i32>} : memref<1x32xf32, #tpu.memory_space<vmem>>, vector<1x32xf32>,
    } else {
    }
    %c0 = arith.constant 0 : index
    %c0_1 = arith.constant 0 : index
    %3 = vector.load %arg2[%c0, %c0_1] : memref<1x512xf32, #tpu.memory_space<vmem>>, vector<1x512xf32>
    %c0_2 = arith.constant 0 : index
    %c0_3 = arith.constant 0 : index
    %4 = vector.load %arg3[%c0_2, %c0_3] : memref<32x512xf32, #tpu.memory_space<vmem>>, vector<32x512xf32>
    %c0_4 = arith.constant 0 : index
    %c0_5 = arith.constant 0 : index
    %5 = vector.load %arg6[%c0_4, %c0_5] : memref<1x32xf32, #tpu.memory_space<vmem>>, vector<1x32xf32>
    %cst = arith.constant dense<0.000000e+00> : vector<1x32xf32>
    %6 = tpu.matmul %3, %4, %cst {dimension_numbers = #tpu.dot_dimension_numbers<[1], [1], [0], [0], [0, 0, 1, 0], [], []>} : vector<1x512xf32>, vector<32x512xf32>, vector<1x32xf32> -> vector<1x32xf32>
    %7 = arith.addf %5, %6 : vector<1x32xf32>
    %c0_6 = arith.constant 0 : index
    %c0_7 = arith.constant 0 : index
    %8 = vector.load %arg6[%c0_6, %c0_7] : memref<1x32xf32, #tpu.memory_space<vmem>>, vector<1x32xf32>
    tpu.vector_store %arg6[%c0_6, %c0_7], %7 {strides = array<i32>} : memref<1x32xf32, #tpu.memory_space<vmem>>, vector<1x32xf32>,
    %c3_i32 = arith.constant 3 : i32
    %9 = arith.cmpi eq, %arg1, %c3_i32 : i32
    %10 = arith.extui %9 : i1 to i32
    %c0_i32_8 = arith.constant 0 : i32
    %11 = arith.cmpi ne, %10, %c0_i32_8 : i32
    scf.if %11 {
      %c0_9 = arith.constant 0 : index
      %c0_10 = arith.constant 0 : index
      %12 = vector.load %arg6[%c0_9, %c0_10] : memref<1x32xf32, #tpu.memory_space<vmem>>, vector<1x32xf32>
      %c0_11 = arith.constant 0 : index
      %c0_12 = arith.constant 0 : index
      %13 = vector.load %arg5[%c0_11, %c0_12] : memref<1x32xf32, #tpu.memory_space<vmem>>, vector<1x32xf32>
      tpu.vector_store %arg5[%c0_11, %c0_12], %12 {strides = array<i32>} : memref<1x32xf32, #tpu.memory_space<vmem>>, vector<1x32xf32>,
    } else {
    }
    return
  }
  func.func @transform_0(%arg0: i32, %arg1: i32) -> (i32, i32) {
    %c0_i32 = arith.constant 0 : i32
    %c0_i32_0 = arith.constant 0 : i32
    return %c0_i32, %arg1 : i32, i32
  }
  func.func @transform_1(%arg0: i32, %arg1: i32) -> (i32, i32) {
    %c0_i32 = arith.constant 0 : i32
    return %arg0, %arg1 : i32, i32
  }
  func.func @transform_2(%arg0: i32, %arg1: i32) -> (i32, i32) {
    %c0_i32 = arith.constant 0 : i32
    %c0_i32_0 = arith.constant 0 : i32
    return %c0_i32, %arg0 : i32, i32
  }
  func.func @transform_3(%arg0: i32, %arg1: i32) -> (i32, i32) {
    %c0_i32 = arith.constant 0 : i32
    %c0_i32_0 = arith.constant 0 : i32
    return %c0_i32, %arg0 : i32, i32
  }
}

</mosaic_0001>

<bundles_post_ra>
// kernel: fc_forward.1
= control target key start
LH: loop header
LB: loop body
LE: loop exit
PB: predicated region body
PF: predicated region fallthrough
CT: control target
= control target key end

     0   :  { %8 = vsyncpa [#allocation4], 0  ;;  %s944_s0 = inlined_call_operand.vmem [shape: f32[1,2048], index: 0, kind: input, shape index: {}]   ;;  %s945_s1 = inlined_call_operand.hbm [shape: f32[32,2048], index: 1, kind: input, shape index: {}]   ;;  %s946_s2 = inlined_call_operand.vmem [shape: f32[1,32], index: 2, kind: input, shape index: {}]   ;;  %s947_s3 = inlined_call_operand.hbm [shape: f32[1,32], index: 3, kind: output, shape index: {}]  }
   0x1   :  { %10 = vsyncpa [#allocation4 + $0x1], 0 }
   0x2   :  { %11 = vsyncpa [#allocation5], 0  ;;  %s758_s12 = smov 0   ;;  %s760_s13 = smov 0  }
   0x3   :  { %s762_s14 = smov 0   ;;  %s764_s15 = smov 0  }
   0x4   :  { %s766_s16 = smov 0   ;;  %s768_s17 = smov 0  }
   0x5 LB: > { %s523_s18 = sadd.s32 4294967295, %s731_s17   ;;  %s26_s19 = sadd.s32 1, %s727_s16  ;;  %s731_s17 = sphi %s768_s17, %s17_s17   ;;  %s727_s16 = sphi %s766_s16, %s957_s16   ;;  %s723_s15 = sphi %s764_s15, %s956_s15   ;;  %s719_s14 = sphi %s762_s14, %s955_s14   ;;  %s715_s13 = sphi %s760_s13, %s954_s13   ;;  %s711_s12 = sphi %s758_s12, %s953_s12  }
   0x6   : > { %p27_p0 = scmp.ge.s32.totalorder %s26_s19, 4  ;;  %s64_s20 = sadd.s32 1, %s719_s14 }
   0x7   : > { %p71_p1 = scmp.ne.s32.totalorder %s719_s14, %s715_s13  ;;  %p72_p2 = scmp.eq.s32.totalorder %s731_s17, 0 }
   0x8   : > { %s959_s19 = smov (%p27_p0, %s26_s19), 0  ;;  %p77_p4 = scmp.ne.s32.totalorder %s715_s13, %s711_s12 }
   0x9   : > { %p794_p3 = por %p72_p2, %p71_p1  ;;  %s60_s22 = ssub.s32 %s727_s16, %s959_s19 }
   0xa   : > { %p78_p5 = scmp.eq.s32.totalorder %s523_s18, 0  ;;  %p62_p6 = scmp.eq.s32.totalorder %s60_s22, 0 }
   0xb   : > { %p566_p8 = scmp.lt.s32.totalorder %s731_s17, 4  ;;  %s167_s25 = sand.u32 1, %s719_s14  }
   0xc   : > { %p803_p7 = por %p78_p5, %p77_p4  ;;  %s539_s26 = sshll.u32 %s727_s16, 9 }
   0xd   : > { %s809_s24 = scalar_select %p62_p6, %s719_s14, %s64_s20  }
   0xe   : > { %s527_s27 = sshll.u32 %s167_s25, 7  ;;  %s816_s30 = scalar_lea.hbm %s945_s1, %s539_s26 }
   0xf   : > { %s171_s4 = scalar_lea.vmem [#allocation3], %s527_s27  ;;  %p820_p9 = pnand %p566_p8, %p794_p3 }
  0x10   : > { %s181_s5 = sshll.u32 %s171_s4, 4  ;;  %s827_s7 = scalar_lea.sflag [#allocation4], %s167_s25  ;;  %s824_s5 = int_to_ptr.vmem [resolvable:$true] %s181_s5 }
  0x11   : > { %s621_s8 = scalar_lea.hbm %s816_s30, 2048  ;;  %p623_p12 = pneg %p820_p9 }
  0x12   : > { %p622_p11 = scmp.ne.s32.totalorder %s816_s30, %s621_s8  ;;  %s626_s11 = scalar_lea.hbm %s945_s1, 8192 }
  0x13   : > { %p627_p1 = scmp.lt.u32.totalorder %s816_s30, %s945_s1  ;;  %p628_p2 = scmp.lt.u32.totalorder %s626_s11, %s621_s8 }
  0x14   : > { %p624_p13 = pnand %p623_p12, %p622_p11  ;;  %p630_p4 = scmp.lt.u32.totalorder %s621_s8, %s816_s30 }
  0x15   : > { %p629_p3 = por %p628_p2, %p627_p1 }
  0x16   : > { %p625_p0 = pneg %p624_p13 }
  0x17   : > { %p631_p5 = por %p630_p4, %p629_p3 }
  0x19   : > { %p632_p6 = pnand %p631_p5, %p625_p0 }
  0x1b   : > { %635 = shalt.err (!%p632_p6)
}
  0x1c   : > { %s636_s21 = scalar_lea.vmem %s824_s5, 2048  ;;  %s733_s22 = smov [#allocation3]  }
  0x1d   : > { %p637_p8 = scmp.ne.s32.totalorder %s824_s5, %s636_s21  ;;  %s641_s25 = sshll.u32 %s733_s22, 4  ;;  %s642_s25 = int_to_ptr.vmem [resolvable:$false] %s641_s25 }
  0x1e   : > { %s643_s26 = scalar_lea.vmem %s642_s25, 4096  ;;  %p644_p10 = scmp.lt.s32.totalorder %s824_s5, %s642_s25 }
  0x1f   : > { %p639_p11 = pnand %p637_p8, %p623_p12  ;;  %p645_p1 = scmp.lt.s32.totalorder %s643_s26, %s636_s21 }
  0x21   : > { %p640_p13 = pneg %p639_p11  ;;  %p646_p2 = por %p645_p1, %p644_p10 }
  0x23   : > { %p647_p3 = pnand %p646_p2, %p640_p13 }
  0x25   : > { %650 = shalt.err (!%p647_p3)
}
  0x26   : > { %s734_s27 = smov 2048   ;;  %s735_s28 = smov 512  }
  0x27   : > { %s736_s29 = smov 32   ;;  %p189_p12 = scmp.lt.s32.totalorder %s731_s17, 5 }
  0x28   : > { %565 = dma.hbm_to_vmem [thread:$0]  (!%p820_p9), %s816_s30, 2048, %s824_s5, %s827_s7, %s734_s27, %s735_s28, %s736_s29  }
  0x29   : > { %p951_p0 = scmp.ge.s32.totalorder %s731_s17, 1 }
  0x2b   : > { %p190_p4 = pnand %p951_p0, %p189_p12 }
  0x2c   : > { %s195_s4 = sand.u32 (!%p190_p4), 1, %s715_s13  }
  0x2d   : > { %193 = sbr.rel (%p190_p4) target bundleno = 333 (0x14d), region = 32  ;;  %s531_s8 = sshll.u32 (!%p190_p4), %s195_s4, 7 }
  0x2e   : > { %s196_s9 = scalar_lea.sflag (!%p190_p4), [#allocation4], %s195_s4  ;;  %s859_s10 = scalar_lea.vmem (!%p190_p4), [#allocation3], %s531_s8 }
  0x34   : > { %702 = dma.done.wait (%p803_p7), %s196_s9, 2048  }
  0x35   : > { %704 = vsyncadd (%p803_p7), %s196_s9, 4294965248  ;;  %s532_s11 = sshll.u32 %s723_s15, 2  ;;  %p533_p9 = scmp.ne.s32.totalorder %s723_s15, 0 }
  0x36   : > { %p225_p10 = scmp.lt.s32.totalorder %s532_s11, 15  ;;  %v238_v0 = vld [vmem:[%s946_s2] sm:$0x1] (!%p533_p9)  ;;  %vm239_vm0 = vcmask (!%p533_p9), 253952  }
  0x37   : > { %237 = sbr.rel (%p533_p9) target bundleno = 62 (0x3e), region = 40  ;;  %240 = vst.msk [vmem:[#allocation2] sm:$0x1] (!%p533_p9), %vm239_vm0, %v238_v0 }
  0x38   : > { %s961_s11 = smov (!%p225_p10, %s532_s11), 15 }
  0x39   : > { %s227_s6 = scalar_lea.vmem %s944_s0, %s961_s11 }
  0x3e PF: > { %v243_v1 = vld [vmem:[%s859_s10 + $0x8] sm:$0xff]  ;;  %v245_v3 = vld [vmem:[%s859_s10 + $0x18] sm:$0xff]  ;;  %v260_v4 = vlaneseq  ;;  %v242_v7 = vld [vmem:[%s859_s10] sm:$0xff]  ;;  %vm421_vm1 = vcmask 253952   ;;  %p534_p7 = scmp.ne.s32.totalorder %s723_s15, 3 }
  0x3f   : > { %v247_v2 = vld [vmem:[%s859_s10 + $0x28] sm:$0xff]  ;;  %v249_v6 = vld [vmem:[%s859_s10 + $0x38] sm:$0xff]  ;;  %v246_v8 = vld [vmem:[%s859_s10 + $0x20] sm:$0xff] }
  0x40   : > { %v540_v5 = vpack.c.bf16 %v247_v2, %v243_v1  ;;  %v548_v9 = vpack.c.bf16 %v249_v6, %v245_v3  ;;  %v542_v10 = vpack.c.bf16 %v246_v8, %v242_v7  ;;  %v244_v11 = vld [vmem:[%s859_s10 + $0x10] sm:$0xff]  ;;  %v251_v13 = vld [vmem:[%s859_s10 + $0x48] sm:$0xff]  ;;  %v261_v14 = vshrl.u32 %v260_v4, 7  ;;  %v253_v17 = vld [vmem:[%s859_s10 + $0x58] sm:$0xff] }
  0x41   : > { %v248_v12 = vld [vmem:[%s859_s10 + $0x30] sm:$0xff]  ;;  %v255_v16 = vld [vmem:[%s859_s10 + $0x68] sm:$0xff]  ;;  %v257_v18 = vld [vmem:[%s859_s10 + $0x78] sm:$0xff] }
  0x42   : > { %541 = vmatprep.subr.bf16.mxu0 %v540_v5  ;;  %v550_v15 = vpack.c.bf16 %v248_v12, %v244_v11  ;;  %549 = vmatprep.subr.bf16.mxu1 %v548_v9  ;;  %v544_v19 = vpack.c.bf16 %v255_v16, %v251_v13  ;;  %v552_v20 = vpack.c.bf16 %v257_v18, %v253_v17  ;;  %v266_v21 = vsub.s32 1, %v261_v14  ;;  %v250_v23 = vld [vmem:[%s859_s10 + $0x40] sm:$0xff]  ;;  %v252_v26 = vld [vmem:[%s859_s10 + $0x50] sm:$0xff]  ;;  %v258_v37 = vld [vmem:[#allocation2] sm:$0x1] }
  0x43   : > { %543 = vmatpush1.bf16.xpose.msra.mxu0 %v542_v10  ;;  %v274_v22 = vsub.s32 3, %v261_v14  ;;  %v254_v24 = vld [vmem:[%s859_s10 + $0x60] sm:$0xff]  ;;  %v256_v27 = vld [vmem:[%s859_s10 + $0x70] sm:$0xff]  ;;  %v262_v32 = vsub.s32 0, %v261_v14  ;;  %v270_v33 = vsub.s32 2, %v261_v14 }
  0x44   : > { %551 = vmatpush1.bf16.xpose.msra.mxu1 %v550_v15  ;;  %v241_v25 = vld [vmem:[%s227_s6] sm:$0xf]  ;;  %545 = vmatprep.subr.bf16.mxu0 %v544_v19  ;;  %v546_v30 = vpack.c.bf16 %v254_v24, %v250_v23  ;;  %v554_v31 = vpack.c.bf16 %v256_v27, %v252_v26 }
  0x45   : > { %553 = vmatprep.subr.bf16.mxu1 %v552_v20  ;;  %v267_v28 = vrot.slane %v241_v25, %v266_v21  ;;  %v275_v29 = vrot.slane %v241_v25, %v274_v22  ;;  %v263_v34 = vrot.slane %v241_v25, %v262_v32  ;;  %v271_v35 = vrot.slane %v241_v25, %v270_v33 }
  0x47   : > { %344 = vmatprep.mubr.f32.mxu0 %v267_v28  ;;  %414 = vmatprep.mubr.f32.mxu1 %v275_v29 }
  0x4b   : > { %547 = vmatpush1.bf16.xpose.msra.mxu0 %v546_v30 }
  0x4c   : > { %555 = vmatpush1.bf16.xpose.msra.mxu1 %v554_v31 }
  0x52   : > { %345 = vmatmul.mubr.f32.vlgmr.msra.gmra.mrb[0].mxu0 %v263_v34 }
  0x53   : > { %415 = vmatmul.mubr.f32.vlgmr.msra.gmra.mrb[0].mxu1 %v271_v35 }
 0x125   : > { %v346_v36 = vpop.f32.mrb[0].mxu0  ;;  %426 = sbr.rel (%p534_p7) target bundleno = 308 (0x134), region = 44 }
 0x126   : > { %v416_v38 = vpop.f32.mrb[0].mxu1  ;;  %v348_v39 = vpop.f32.mrb[1].mxu0 }
 0x127   : > { %v417_v40 = vadd.f32 %v416_v38, %v346_v36  ;;  %v418_v41 = vpop.f32.mrb[1].mxu1 }
 0x129   : > { %v420_v42 = vadd.f32 %v417_v40, %v258_v37 }
 0x12b   : > { %422 = vst.msk [vmem:[#allocation2] sm:$0x1] %vm421_vm1, %v420_v42 }
 0x132   : > { %v427_v43 = vld [vmem:[#allocation2] sm:$0x1] }
 0x133   : > { %428 = vst.msk [vmem:[#allocation6] sm:$0x1] %vm421_vm1, %v427_v43 }
 0x134 PF: > { %p900_p5 = scmp.eq.s32.totalorder %s523_s18, 3  ;;  %s737_s22 = smov [#allocation6]  }
 0x135   : > { %s438_s25 = sshll.u32 %s737_s22, 4  ;;  %s439_s25 = int_to_ptr.vmem [resolvable:$true] %s438_s25 }
 0x136   : > { %s651_s26 = scalar_lea.vmem %s439_s25, 16  ;;  %s657_s15 = scalar_lea.vmem %s439_s25, 32 }
 0x137   : > { %p652_p6 = scmp.ne.s32.totalorder %s439_s25, %s651_s26  ;;  %p658_p13 = scmp.lt.s32.totalorder %s439_s25, %s439_s25 }
 0x138   : > { %p659_p1 = scmp.lt.s32.totalorder %s657_s15, %s651_s26 }
 0x139   : > { %p653_p8 = pnand %p652_p6, %p900_p5 }
 0x13a   : > { %p660_p2 = por %p659_p1, %p658_p13 }
 0x13b   : > { %p654_p11 = pneg %p653_p8 }
 0x13d   : > { %p661_p3 = pnand %p660_p2, %p654_p11 }
 0x13f   : > { %664 = shalt.err (!%p661_p3)
}
 0x140   : > { %s665_s28 = scalar_lea.hbm %s947_s3, 16 }
 0x141   : > { %p666_p12 = scmp.ne.s32.totalorder %s947_s3, %s665_s28  ;;  %p671_p10 = scmp.lt.u32.totalorder %s665_s28, %s947_s3 }
 0x143   : > { %p667_p0 = pnand %p666_p12, %p900_p5 }
 0x145   : > { %p668_p4 = pneg %p667_p0 }
 0x147   : > { %p673_p9 = pnand %p671_p10, %p668_p4 }
 0x149   : > { %676 = shalt.err (!%p673_p9)
}
 0x14a   : > { %559 = dma.vmem_to_hbm [thread:$0]  (%p900_p5), %s439_s25, 16, %s947_s3, [#allocation5]  }
 0x14b   : > { %706 = dma.done.wait (%p900_p5), [#allocation5], 16  }
 0x14c   : > { %708 = vsyncadd (%p900_p5), [#allocation5], 4294967280 }
 0x14d PF: > { %s17_s17 = sadd.s32 1, %s731_s17   ;;  %s953_s12 = smov %s715_s13 }
 0x14e   : > { %p14_p7 = scmp.ge.s32.totalorder %s17_s17, 6   ;;  %s954_s13 = smov %s719_s14 }
 0x14f   : > { %s955_s14 = smov %s809_s24  ;;  %s956_s15 = smov %s727_s16 }
 0x150   : > { %s957_s16 = smov %s959_s19  ;;  %16 = sbr.rel (!%p14_p7) target bundleno = 5 (0x5), region = 84 }
 0x157   :  { %451 = vsyncpa [#allocation4], 1 }
 0x158   :  { %453 = vsyncpa [#allocation4 + $0x1], 1 }
 0x159   :  { %454 = vsyncpa [#allocation5], 1 }
 0x15a   :  { %456 = vsyncpa [#allocation5 + $0x1], 1 }

</bundles_post_ra>
